<compile_context>
chip_gen: v7x
topology: tpu7x:2x2x1
jax: 0.10.0
libtpu: 0.0.40
codegen_flags: <defaults>
</compile_context>

<pallas_src>
import functools

import numpy as np
import jax
import jax.numpy as jnp
from jax.experimental import pallas as pl
from jax.experimental.pallas import tpu as pltpu

NEG_SLOPE = 0.1  # LeakyReLU negative slope used throughout the module


def _leaky(v):
    return jnp.where(v > 0, v, NEG_SLOPE * v)


# ---------------------------------------------------------------------------
# Pallas kernel: grid = (batch, levels); one pyramid level per grid step.
# ---------------------------------------------------------------------------
def _pyramid_kernel(x_ref, w_ref, pwT_ref, ph_ref, lwT_ref, lh_ref, o_ref,
                    *, C, H, W, PHm, PWm):
    f32, bf16 = jnp.float32, jnp.bfloat16
    l = pl.program_id(1)

    x3 = x_ref[0]                                   # (C+1, H, W) f32, ch C == 1

    # Identity path with the final /2 folded in.  The output block is the
    # accumulator, resident across the 'levels' grid axis.
    @pl.when(l == 0)
    def _init():
        o_ref[0] = 0.5 * x3[:C]

    # ---- factored avg-pool, batched over channels (single MXU matmul on W) --
    xr = x3.astype(bf16).reshape((C + 1) * H, W)
    t = jnp.dot(xr, pwT_ref[0], preferred_element_type=f32)      # ((C+1)*H, PWm)
    t3 = t.reshape(C + 1, H, PWm).astype(bf16)                   # (C+1, H, PWm)
    ph_b = jnp.broadcast_to(ph_ref[0], (C + 1, PHm, H))
    p = jnp.einsum('cph,chq->cpq', ph_b, t3,
                   preferred_element_type=f32)                   # (C+1, PHm, PWm)

    # ---- 1x1 conv (+folded BN); bias rides on the ones channel -------------
    pt = jnp.transpose(p, (1, 0, 2)).astype(bf16)                # (PHm, C+1, PWm)
    w_b = jnp.broadcast_to(w_ref[0], (PHm, C, C + 1))
    z = jnp.einsum('poc,pcq->poq', w_b, pt,
                   preferred_element_type=f32)                   # (PHm, C, PWm)
    z = _leaky(z)                                                # LeakyReLU(0.1)
    z = jnp.transpose(z, (1, 0, 2)).astype(bf16)                 # (C, PHm, PWm)

    # ---- factored bilinear upsample, batched over channels ------------------
    u = jnp.dot(z.reshape(C * PHm, PWm), lwT_ref[0],
                preferred_element_type=f32)                      # (C*PHm, W)
    u3 = u.reshape(C, PHm, W)                                    # stays f32
    lh_b = jnp.broadcast_to(lh_ref[0], (C, H, PHm))              # f32, 1/(2L) folded
    up = jnp.einsum('chp,cpw->chw', lh_b, u3,
                    preferred_element_type=f32)                  # (C, H, W) f32

    o_ref[0] = o_ref[0] + up                                     # scale pre-folded

    @pl.when(l == pl.num_programs(1) - 1)
    def _final():
        o_ref[0] = _leaky(o_ref[0])                              # final LeakyReLU


# ---------------------------------------------------------------------------
# Build pooling / interpolation matrices + folded conv/BN params.
# ---------------------------------------------------------------------------
def _pool_matrix(in_size, k):
    """Non-overlapping avg_pool (stride == kernel, padding 0) as a matrix."""
    out = in_size // k
    m = np.zeros((out, in_size), np.float32)
    for o in range(out):
        m[o, o * k:(o + 1) * k] = 1.0 / k
    return m


def _upsample_matrix(out_size, in_size):
    """F.interpolate bilinear, align_corners=False, as a (out, in) matrix."""
    scale = in_size / out_size
    m = np.zeros((out_size, in_size), np.float32)
    for i in range(out_size):
        src = scale * (i + 0.5) - 0.5
        src = max(src, 0.0)
        i0 = min(int(np.floor(src)), in_size - 1)
        i1 = min(i0 + 1, in_size - 1)
        lam = src - i0
        m[i, i0] += 1.0 - lam
        m[i, i1] += lam
    return m


def build_params(C, H, W, levels, key):
    """Deterministic parameter init + precomputed kernel-side matrices."""
    # pooling schedule, exactly as in the PyTorch forward
    pools = np.linspace(1, min(H, W) // 2, levels, dtype=int)
    k_sizes = [(int(H / p), int(W / p)) for p in pools][::-1]

    # conv (1x1, bias) + BatchNorm2d params (eval mode), deterministic
    k1, k2, k3, k4, k5, k6 = jax.random.split(key, 6)
    wconv = jax.random.normal(k1, (levels, C, C), jnp.float32) / np.sqrt(C)
    bconv = 0.1 * jax.random.normal(k2, (levels, C), jnp.float32)
    gamma = 1.0 + 0.1 * jax.random.normal(k3, (levels, C), jnp.float32)
    beta = 0.1 * jax.random.normal(k4, (levels, C), jnp.float32)
    rmean = 0.1 * jax.random.normal(k5, (levels, C), jnp.float32)
    rvar = 1.0 + 0.1 * jnp.abs(jax.random.normal(k6, (levels, C), jnp.float32))
    eps = 1e-5
    s = gamma / jnp.sqrt(rvar + eps)                       # (L, C)
    w_eff = np.asarray(wconv * s[:, :, None])              # fold BN into conv
    b_eff = np.asarray(bconv * s + (beta - rmean * s))

    phs, pws, lhs, lws = [], [], [], []
    for (kh, kw) in k_sizes:
        ph_sz, pw_sz = H // kh, W // kw
        phs.append(_pool_matrix(H, kh))
        pws.append(_pool_matrix(W, kw))
        lhs.append(_upsample_matrix(H, ph_sz))
        lws.append(_upsample_matrix(W, pw_sz))

    PHm = max(m.shape[0] for m in phs)
    PWm = max(m.shape[0] for m in pws)

    w_aug = np.zeros((levels, C, C + 1), np.float32)       # bias in last column
    pwT = np.zeros((levels, W, PWm), np.float32)
    ph = np.zeros((levels, PHm, H), np.float32)
    lwT = np.zeros((levels, PWm, W), np.float32)
    lh = np.zeros((levels, H, PHm), np.float32)

    scale = 1.0 / (2.0 * levels)        # folds 1/levels and the final /2
    for i in range(levels):
        w_aug[i, :, :C] = w_eff[i]
        w_aug[i, :, C] = b_eff[i]
        ph[i, :phs[i].shape[0], :] = phs[i]
        pwT[i, :, :pws[i].shape[0]] = pws[i].T
        lh[i, :, :lhs[i].shape[1]] = scale * lhs[i]
        lwT[i, :lws[i].shape[1], :] = lws[i].T

    packed = (
        jnp.asarray(w_aug, jnp.bfloat16),    # (L, C, C+1)   conv(+BN)+bias
        jnp.asarray(pwT, jnp.bfloat16),      # (L, W, PWm)   W-pool^T
        jnp.asarray(ph, jnp.bfloat16),       # (L, PHm, H)   H-pool
        jnp.asarray(lwT, jnp.bfloat16),      # (L, PWm, W)   W-upsample^T
        jnp.asarray(lh, jnp.float32),        # (L, H, PHm)   H-upsample * 1/(2L)
    )
    ref_parts = (jnp.asarray(w_eff), jnp.asarray(b_eff), k_sizes, lhs, lws)
    return packed, ref_parts


# ---------------------------------------------------------------------------
# Wrapper calling pallas_call
# ---------------------------------------------------------------------------
def pyramid_pooling_forward(x, packed_params, levels):
    N, C, H, W = x.shape
    w_aug, pwT, ph, lwT, lh = packed_params
    PHm, PWm = ph.shape[1], pwT.shape[2]

    # Ones channel carries the (BN-folded) conv bias through the pooling
    # matmuls and keeps padded pooled positions exactly zero.
    x_aug = jnp.concatenate([x, jnp.ones((N, 1, H, W), x.dtype)], axis=1)

    kernel = functools.partial(_pyramid_kernel, C=C, H=H, W=W, PHm=PHm, PWm=PWm)

    out = pl.pallas_call(
        kernel,
        out_shape=jax.ShapeDtypeStruct((N, C, H, W), jnp.float32),
        grid=(N, levels),
        in_specs=[
            pl.BlockSpec((1, C + 1, H, W), lambda n, l: (n, 0, 0, 0)),   # x (+ones)
            pl.BlockSpec((1, C, C + 1), lambda n, l: (l, 0, 0)),         # conv+bias
            pl.BlockSpec((1, W, PWm), lambda n, l: (l, 0, 0)),           # W-pool^T
            pl.BlockSpec((1, PHm, H), lambda n, l: (l, 0, 0)),           # H-pool
            pl.BlockSpec((1, PWm, W), lambda n, l: (l, 0, 0)),           # W-up^T
            pl.BlockSpec((1, H, PHm), lambda n, l: (l, 0, 0)),           # H-up (f32)
        ],
        out_specs=pl.BlockSpec((1, C, H, W), lambda n, l: (n, 0, 0, 0)),
        compiler_params=pltpu.CompilerParams(
            dimension_semantics=("parallel", "arbitrary"),
            # tiny blocks; well under the v7x 64 MiB / 32 MiB scoped budget
            vmem_limit_bytes=32 * 1024 * 1024),
    )(x_aug, w_aug, pwT, ph, lwT, lh)
    return out


# ---------------------------------------------------------------------------
# Pure-JAX f32 reference (independent math path) for validation
# ---------------------------------------------------------------------------
def reference_forward(x, w_eff, b_eff, k_sizes, lhs, lws, levels):
    N, C, H, W = x.shape
    pp = x
    for i, (kh, kw) in enumerate(k_sizes):
        ph, pw = H // kh, W // kw
        pooled = x[:, :, :ph * kh, :pw * kw].reshape(
            N, C, ph, kh, pw, kw).mean(axis=(3, 5))
        z = jnp.einsum('oc,ncpq->nopq', w_eff[i], pooled) \
            + b_eff[i][None, :, None, None]
        z = jnp.where(z > 0, z, NEG_SLOPE * z)
        up = jnp.einsum('hp,nopq,wq->nohw',
                        jnp.asarray(lhs[i]), z, jnp.asarray(lws[i]))
        pp = pp + (1.0 / levels) * up
    pp = pp * 0.5
    return jnp.where(pp > 0, pp, NEG_SLOPE * pp)


if __name__ == "__main__":
    N, C, H, W = 2, 4, 16, 16
    levels = 4

    key = jax.random.PRNGKey(0)
    kx, kp = jax.random.split(key)
    x = jax.random.normal(kx, (N, C, H, W), jnp.float32)

    packed, ref_parts = build_params(C, H, W, levels, kp)

    out = pyramid_pooling_forward(x, packed, levels)
    out = jax.block_until_ready(out)

    ref = reference_forward(x, *ref_parts, levels)
    np.testing.assert_allclose(np.asarray(out), np.asarray(ref),
                               rtol=2e-2, atol=2e-2)
    print("KERNEL_OK")
</pallas_src>

<mosaic_0001>
module attributes {stable_mosaic.version = 11 : i64} {
  func.func @_pyramid_kernel(%arg0: i32, %arg1: i32, %arg2: memref<1x5x16x16xf32, #tpu.memory_space<vmem>>, %arg3: memref<1x4x5xbf16, #tpu.memory_space<vmem>>, %arg4: memref<1x16x8xbf16, #tpu.memory_space<vmem>>, %arg5: memref<1x8x16xbf16, #tpu.memory_space<vmem>>, %arg6: memref<1x8x16xbf16, #tpu.memory_space<vmem>>, %arg7: memref<1x16x8xf32, #tpu.memory_space<vmem>>, %arg8: memref<1x4x16x16xf32, #tpu.memory_space<vmem>>) attributes {dimension_semantics = [#tpu.dimension_semantics<parallel>, #tpu.dimension_semantics<arbitrary>], iteration_bounds = array<i64: 2, 4>, scalar_prefetch = 0 : i64, scratch_operands = 0 : i64, tpu.core_type = #tpu.core_type<tc>, window_params = [{transform_indices = @transform_0, window_bounds = array<i64: 1, 5, 16, 16>}, {transform_indices = @transform_1, window_bounds = array<i64: 1, 4, 5>}, {transform_indices = @transform_2, window_bounds = array<i64: 1, 16, 8>}, {transform_indices = @transform_3, window_bounds = array<i64: 1, 8, 16>}, {transform_indices = @transform_4, window_bounds = array<i64: 1, 8, 16>}, {transform_indices = @transform_5, window_bounds = array<i64: 1, 16, 8>}, {transform_indices = @transform_6, window_bounds = array<i64: 1, 4, 16, 16>}]} {
    %c0 = arith.constant 0 : index
    %c0_0 = arith.constant 0 : index
    %c0_1 = arith.constant 0 : index
    %c0_2 = arith.constant 0 : index
    %0 = vector.load %arg2[%c0, %c0_0, %c0_1, %c0_2] : memref<1x5x16x16xf32, #tpu.memory_space<vmem>>, vector<1x5x16x16xf32>
    %1 = vector.shape_cast %0 : vector<1x5x16x16xf32> to vector<5x16x16xf32>
    %c0_i32 = arith.constant 0 : i32
    %2 = arith.cmpi eq, %arg1, %c0_i32 : i32
    %3 = arith.extui %2 : i1 to i32
    %c0_i32_3 = arith.constant 0 : i32
    %4 = arith.cmpi ne, %3, %c0_i32_3 : i32
    scf.if %4 {
      %50 = vector.extract_strided_slice %1 {offsets = [0, 0, 0], sizes = [4, 16, 16], strides = [1, 1, 1]} : vector<5x16x16xf32> to vector<4x16x16xf32>
      %cst_34 = arith.constant 5.000000e-01 : f32
      %51 = vector.broadcast %cst_34 : f32 to vector<4x16x16xf32>
      %52 = arith.mulf %51, %50 : vector<4x16x16xf32>
      %c0_35 = arith.constant 0 : index
      %c0_36 = arith.constant 0 : index
      %c0_37 = arith.constant 0 : index
      %c0_38 = arith.constant 0 : index
      %53 = vector.load %arg8[%c0_35, %c0_36, %c0_37, %c0_38] : memref<1x4x16x16xf32, #tpu.memory_space<vmem>>, vector<1x4x16x16xf32>
      %54 = vector.shape_cast %53 : vector<1x4x16x16xf32> to vector<4x16x16xf32>
      %55 = vector.shape_cast %52 : vector<4x16x16xf32> to vector<1x4x16x16xf32>
      tpu.vector_store %arg8[%c0_35, %c0_36, %c0_37, %c0_38], %55 {strides = array<i32>} : memref<1x4x16x16xf32, #tpu.memory_space<vmem>>, vector<1x4x16x16xf32>,
    } else {
    }
    %5 = arith.truncf %1 : vector<5x16x16xf32> to vector<5x16x16xbf16>
    %6 = vector.shape_cast %5 : vector<5x16x16xbf16> to vector<80x16xbf16>
    %c0_4 = arith.constant 0 : index
    %c0_5 = arith.constant 0 : index
    %c0_6 = arith.constant 0 : index
    %7 = vector.load %arg4[%c0_4, %c0_5, %c0_6] : memref<1x16x8xbf16, #tpu.memory_space<vmem>>, vector<1x16x8xbf16>
    %8 = vector.shape_cast %7 : vector<1x16x8xbf16> to vector<16x8xbf16>
    %cst = arith.constant dense<0.000000e+00> : vector<80x8xf32>
    %9 = tpu.matmul %6, %8, %cst {dimension_numbers = #tpu.dot_dimension_numbers<[1], [0], [0], [1], [0, 0, 1, 1], [], []>} : vector<80x16xbf16>, vector<16x8xbf16>, vector<80x8xf32> -> vector<80x8xf32>
    %10 = vector.shape_cast %9 : vector<80x8xf32> to vector<5x16x8xf32>
    %11 = arith.truncf %10 : vector<5x16x8xf32> to vector<5x16x8xbf16>
    %c0_7 = arith.constant 0 : index
    %c0_8 = arith.constant 0 : index
    %c0_9 = arith.constant 0 : index
    %12 = vector.load %arg5[%c0_7, %c0_8, %c0_9] : memref<1x8x16xbf16, #tpu.memory_space<vmem>>, vector<1x8x16xbf16>
    %13 = vector.shape_cast %12 : vector<1x8x16xbf16> to vector<8x16xbf16>
    %14 = vector.shape_cast %13 : vector<8x16xbf16> to vector<1x8x16xbf16>
    %15 = vector.broadcast %14 : vector<1x8x16xbf16> to vector<5x8x16xbf16>
    "tpu.trace_start"() <{level = 10 : i32, message = "cph,chq->cpq"}> : () -> ()
    %cst_10 = arith.constant dense<0.000000e+00> : vector<5x8x8xf32>
    %16 = tpu.matmul %15, %11, %cst_10 {dimension_numbers = #tpu.dot_dimension_numbers<[2], [1], [1], [2], [0, 0, 0, 1, 1, 2], [0], [0]>} : vector<5x8x16xbf16>, vector<5x16x8xbf16>, vector<5x8x8xf32> -> vector<5x8x8xf32>
    "tpu.trace_stop"() : () -> ()
    %17 = tpu.transpose %16, [1, 0, 2] : vector<5x8x8xf32> -> vector<8x5x8xf32>
    %18 = arith.truncf %17 : vector<8x5x8xf32> to vector<8x5x8xbf16>
    %c0_11 = arith.constant 0 : index
    %c0_12 = arith.constant 0 : index
    %c0_13 = arith.constant 0 : index
    %19 = vector.load %arg3[%c0_11, %c0_12, %c0_13] : memref<1x4x5xbf16, #tpu.memory_space<vmem>>, vector<1x4x5xbf16>
    %20 = vector.shape_cast %19 : vector<1x4x5xbf16> to vector<4x5xbf16>
    %21 = vector.shape_cast %20 : vector<4x5xbf16> to vector<1x4x5xbf16>
    %22 = vector.broadcast %21 : vector<1x4x5xbf16> to vector<8x4x5xbf16>
    "tpu.trace_start"() <{level = 10 : i32, message = "poc,pcq->poq"}> : () -> ()
    %cst_14 = arith.constant dense<0.000000e+00> : vector<8x4x8xf32>
    %23 = tpu.matmul %22, %18, %cst_14 {dimension_numbers = #tpu.dot_dimension_numbers<[2], [1], [1], [2], [0, 0, 0, 1, 1, 2], [0], [0]>} : vector<8x4x5xbf16>, vector<8x5x8xbf16>, vector<8x4x8xf32> -> vector<8x4x8xf32>
    %cst_15 = arith.constant 0.000000e+00 : f32
    "tpu.trace_stop"() : () -> ()
    %24 = vector.broadcast %cst_15 : f32 to vector<8x4x8xf32>
    %25 = arith.cmpf ogt, %23, %24 : vector<8x4x8xf32>
    %cst_16 = arith.constant 1.000000e-01 : f32
    %26 = vector.broadcast %cst_16 : f32 to vector<8x4x8xf32>
    %27 = arith.mulf %26, %23 : vector<8x4x8xf32>
    %28 = arith.select %25, %23, %27 : vector<8x4x8xi1>, vector<8x4x8xf32>
    %29 = tpu.transpose %28, [1, 0, 2] : vector<8x4x8xf32> -> vector<4x8x8xf32>
    %30 = arith.truncf %29 : vector<4x8x8xf32> to vector<4x8x8xbf16>
    %31 = vector.shape_cast %30 : vector<4x8x8xbf16> to vector<32x8xbf16>
    %c0_17 = arith.constant 0 : index
    %c0_18 = arith.constant 0 : index
    %c0_19 = arith.constant 0 : index
    %32 = vector.load %arg6[%c0_17, %c0_18, %c0_19] : memref<1x8x16xbf16, #tpu.memory_space<vmem>>, vector<1x8x16xbf16>
    %33 = vector.shape_cast %32 : vector<1x8x16xbf16> to vector<8x16xbf16>
    %cst_20 = arith.constant dense<0.000000e+00> : vector<32x16xf32>
    %34 = tpu.matmul %31, %33, %cst_20 {dimension_numbers = #tpu.dot_dimension_numbers<[1], [0], [0], [1], [0, 0, 1, 1], [], []>} : vector<32x8xbf16>, vector<8x16xbf16>, vector<32x16xf32> -> vector<32x16xf32>
    %35 = vector.shape_cast %34 : vector<32x16xf32> to vector<4x8x16xf32>
    %c0_21 = arith.constant 0 : index
    %c0_22 = arith.constant 0 : index
    %c0_23 = arith.constant 0 : index
    %36 = vector.load %arg7[%c0_21, %c0_22, %c0_23] : memref<1x16x8xf32, #tpu.memory_space<vmem>>, vector<1x16x8xf32>
    %37 = vector.shape_cast %36 : vector<1x16x8xf32> to vector<16x8xf32>
    %38 = vector.shape_cast %37 : vector<16x8xf32> to vector<1x16x8xf32>
    %39 = vector.broadcast %38 : vector<1x16x8xf32> to vector<4x16x8xf32>
    "tpu.trace_start"() <{level = 10 : i32, message = "chp,cpw->chw"}> : () -> ()
    %cst_24 = arith.constant dense<0.000000e+00> : vector<4x16x16xf32>
    %40 = tpu.matmul %39, %35, %cst_24 {dimension_numbers = #tpu.dot_dimension_numbers<[2], [1], [1], [2], [0, 0, 0, 1, 1, 2], [0], [0]>} : vector<4x16x8xf32>, vector<4x8x16xf32>, vector<4x16x16xf32> -> vector<4x16x16xf32>
    "tpu.trace_stop"() : () -> ()
    %c0_25 = arith.constant 0 : index
    %c0_26 = arith.constant 0 : index
    %c0_27 = arith.constant 0 : index
    %c0_28 = arith.constant 0 : index
    %41 = vector.load %arg8[%c0_25, %c0_26, %c0_27, %c0_28] : memref<1x4x16x16xf32, #tpu.memory_space<vmem>>, vector<1x4x16x16xf32>
    %42 = vector.shape_cast %41 : vector<1x4x16x16xf32> to vector<4x16x16xf32>
    %43 = arith.addf %42, %40 : vector<4x16x16xf32>
    %c0_29 = arith.constant 0 : index
    %c0_30 = arith.constant 0 : index
    %c0_31 = arith.constant 0 : index
    %c0_32 = arith.constant 0 : index
    %44 = vector.load %arg8[%c0_29, %c0_30, %c0_31, %c0_32] : memref<1x4x16x16xf32, #tpu.memory_space<vmem>>, vector<1x4x16x16xf32>
    %45 = vector.shape_cast %44 : vector<1x4x16x16xf32> to vector<4x16x16xf32>
    %46 = vector.shape_cast %43 : vector<4x16x16xf32> to vector<1x4x16x16xf32>
    tpu.vector_store %arg8[%c0_29, %c0_30, %c0_31, %c0_32], %46 {strides = array<i32>} : memref<1x4x16x16xf32, #tpu.memory_space<vmem>>, vector<1x4x16x16xf32>,
    %c3_i32 = arith.constant 3 : i32
    %47 = arith.cmpi eq, %arg1, %c3_i32 : i32
    %48 = arith.extui %47 : i1 to i32
    %c0_i32_33 = arith.constant 0 : i32
    %49 = arith.cmpi ne, %48, %c0_i32_33 : i32
    scf.if %49 {
      %c0_34 = arith.constant 0 : index
      %c0_35 = arith.constant 0 : index
      %c0_36 = arith.constant 0 : index
      %c0_37 = arith.constant 0 : index
      %50 = vector.load %arg8[%c0_34, %c0_35, %c0_36, %c0_37] : memref<1x4x16x16xf32, #tpu.memory_space<vmem>>, vector<1x4x16x16xf32>
      %51 = vector.shape_cast %50 : vector<1x4x16x16xf32> to vector<4x16x16xf32>
      %cst_38 = arith.constant 0.000000e+00 : f32
      %52 = vector.broadcast %cst_38 : f32 to vector<4x16x16xf32>
      %53 = arith.cmpf ogt, %51, %52 : vector<4x16x16xf32>
      %cst_39 = arith.constant 1.000000e-01 : f32
      %54 = vector.broadcast %cst_39 : f32 to vector<4x16x16xf32>
      %55 = arith.mulf %54, %51 : vector<4x16x16xf32>
      %56 = arith.select %53, %51, %55 : vector<4x16x16xi1>, vector<4x16x16xf32>
      %c0_40 = arith.constant 0 : index
      %c0_41 = arith.constant 0 : index
      %c0_42 = arith.constant 0 : index
      %c0_43 = arith.constant 0 : index
      %57 = vector.load %arg8[%c0_40, %c0_41, %c0_42, %c0_43] : memref<1x4x16x16xf32, #tpu.memory_space<vmem>>, vector<1x4x16x16xf32>
      %58 = vector.shape_cast %57 : vector<1x4x16x16xf32> to vector<4x16x16xf32>
      %59 = vector.shape_cast %56 : vector<4x16x16xf32> to vector<1x4x16x16xf32>
      tpu.vector_store %arg8[%c0_40, %c0_41, %c0_42, %c0_43], %59 {strides = array<i32>} : memref<1x4x16x16xf32, #tpu.memory_space<vmem>>, vector<1x4x16x16xf32>,
    } else {
    }
    return
  }
  func.func @transform_0(%arg0: i32, %arg1: i32) -> (i32, i32, i32, i32) {
    %c0_i32 = arith.constant 0 : i32
    %c0_i32_0 = arith.constant 0 : i32
    %c0_i32_1 = arith.constant 0 : i32
    %c0_i32_2 = arith.constant 0 : i32
    return %arg0, %c0_i32, %c0_i32_0, %c0_i32_1 : i32, i32, i32, i32
  }
  func.func @transform_1(%arg0: i32, %arg1: i32) -> (i32, i32, i32) {
    %c0_i32 = arith.constant 0 : i32
    %c0_i32_0 = arith.constant 0 : i32
    %c0_i32_1 = arith.constant 0 : i32
    return %arg1, %c0_i32, %c0_i32_0 : i32, i32, i32
  }
  func.func @transform_2(%arg0: i32, %arg1: i32) -> (i32, i32, i32) {
    %c0_i32 = arith.constant 0 : i32
    %c0_i32_0 = arith.constant 0 : i32
    %c0_i32_1 = arith.constant 0 : i32
    return %arg1, %c0_i32, %c0_i32_0 : i32, i32, i32
  }
  func.func @transform_3(%arg0: i32, %arg1: i32) -> (i32, i32, i32) {
    %c0_i32 = arith.constant 0 : i32
    %c0_i32_0 = arith.constant 0 : i32
    %c0_i32_1 = arith.constant 0 : i32
    return %arg1, %c0_i32, %c0_i32_0 : i32, i32, i32
  }
  func.func @transform_4(%arg0: i32, %arg1: i32) -> (i32, i32, i32) {
    %c0_i32 = arith.constant 0 : i32
    %c0_i32_0 = arith.constant 0 : i32
    %c0_i32_1 = arith.constant 0 : i32
    return %arg1, %c0_i32, %c0_i32_0 : i32, i32, i32
  }
  func.func @transform_5(%arg0: i32, %arg1: i32) -> (i32, i32, i32) {
    %c0_i32 = arith.constant 0 : i32
    %c0_i32_0 = arith.constant 0 : i32
    %c0_i32_1 = arith.constant 0 : i32
    return %arg1, %c0_i32, %c0_i32_0 : i32, i32, i32
  }
  func.func @transform_6(%arg0: i32, %arg1: i32) -> (i32, i32, i32, i32) {
    %c0_i32 = arith.constant 0 : i32
    %c0_i32_0 = arith.constant 0 : i32
    %c0_i32_1 = arith.constant 0 : i32
    %c0_i32_2 = arith.constant 0 : i32
    return %arg0, %c0_i32, %c0_i32_0, %c0_i32_1 : i32, i32, i32, i32
  }
}

</mosaic_0001>

<bundles_post_ra>
// kernel: tpu_custom_call.1
= control target key start
LH: loop header
LB: loop body
LE: loop exit
PB: predicated region body
PF: predicated region fallthrough
CT: control target
= control target key end

     0   :  { %s2789_s0 = inlined_call_operand.hbm [shape: f32[2,5,16,16], index: 0, kind: input, shape index: {}]   ;;  %s2790_s1 = inlined_call_operand.vmem [shape: bf16[4,4,5], index: 1, kind: input, shape index: {}]   ;;  %s2791_s2 = inlined_call_operand.vmem [shape: bf16[4,16,8], index: 2, kind: input, shape index: {}]   ;;  %s2792_s3 = inlined_call_operand.vmem [shape: bf16[4,8,16], index: 3, kind: input, shape index: {}]   ;;  %s2793_s4 = inlined_call_operand.vmem [shape: bf16[4,8,16], index: 4, kind: input, shape index: {}]   ;;  %s2794_s5 = inlined_call_operand.vmem [shape: f32[4,16,8], index: 5, kind: input, shape index: {}]   ;;  %s2795_s6 = inlined_call_operand.hbm [shape: f32[2,4,16,16], index: 6, kind: output, shape index: {}]  }
   0x1   :  { %2802 = sst [smem:[#allocation15_spill]] %s2789_s0 }
   0x2   :  { %11 = vsyncpa [#allocation3], 0 }
   0x3   :  { %13 = vsyncpa [#allocation3 + $0x1], 0 }
   0x4   :  { %14 = vsyncpa [#allocation4], 0 }
   0x5   :  { %16 = vsyncpa [#allocation4 + $0x1], 0  ;;  %s2393_s21 = smov 0   ;;  %s2395_s22 = smov 0  }
   0x6   :  { %s2397_s23 = smov 0   ;;  %s2399_s24 = smov 0  }
   0x7   :  { %s2401_s25 = smov 0   ;;  %s2403_s26 = smov 0  }
   0x8   :  { %s2405_s27 = smov 0   ;;  %s2407_s28 = smov 0  }
   0x9 LB: > { %2803 = sst [smem:[#allocation8_spill]] %s2321_s22  ;;  %s1895_s29 = sadd.s32 4294967295, %s2345_s28   ;;  %s2345_s28 = sphi %s2407_s28, %s22_s28   ;;  %s2341_s27 = sphi %s2405_s27, %s2825_s27   ;;  %s2337_s26 = sphi %s2403_s26, %s2824_s26   ;;  %s2333_s25 = sphi %s2401_s25, %s2823_s25   ;;  %s2329_s24 = sphi %s2399_s24, %s2822_s24   ;;  %s2325_s23 = sphi %s2397_s23, %s2821_s23   ;;  %s2321_s22 = sphi %s2395_s22, %s2820_s22   ;;  %s2317_s21 = sphi %s2393_s21, %s2819_s21  }
   0xa   : > { %2804 = sst [smem:[#allocation9_spill]] %s2325_s23  ;;  %s1896_s30 = sadd.s32 4294967294, %s2345_s28  }
   0xb   : > { %2805 = sst [smem:[#allocation10_spill]] %s2337_s26  ;;  %s31_s7 = sadd.s32 1, %s2337_s26 }
   0xc   : > { %2806 = sst [smem:[#allocation11_spill]] %s2341_s27  ;;  %s34_s8 = sadd.s32 1, %s2341_s27 }
   0xd   : > { %p32_p0 = scmp.ge.s32.totalorder %s31_s7, 4  ;;  %s41_s9 = sadd.s32 1, %s2325_s23 }
   0xe   : > { %p48_p1 = scmp.ne.s32.totalorder %s2325_s23, %s2321_s22  ;;  %p49_p2 = scmp.eq.s32.totalorder %s2345_s28, 0 }
   0xf   : > { %s2827_s7 = smov (%p32_p0, %s31_s7), 0  ;;  %s2829_s8 = smov (!%p32_p0, %s34_s8), %s2341_s27 }
  0x10   : > { %2807 = sst [smem:[#allocation12_spill]] %s2827_s7  ;;  %p2444_p3 = por %p49_p2, %p48_p1 }
  0x11   : > { %p54_p4 = scmp.ne.s32.totalorder %s2321_s22, %s2317_s21  ;;  %p36_p5 = scmp.ge.s32.totalorder %s2829_s8, 2 }
  0x12   : > { %p55_p6 = scmp.eq.s32.totalorder %s1895_s29, 0  ;;  %p208_p7 = scmp.eq.s32.totalorder %s1895_s29, 7 }
  0x13   : > { %p214_p8 = scmp.eq.s32.totalorder %s1896_s30, 7  ;;  %s2831_s8 = smov (%p36_p5, %s2829_s8), 0 }
  0x14   : > { %2809 = sst [smem:[#allocation13_spill]] %s2831_s8  ;;  %p2452_p9 = por %p55_p6, %p54_p4 }
  0x15   : > { %p2456_p10 = por %p208_p7, %p48_p1  ;;  %s38_s13 = ssub.s32 %s2341_s27, %s2831_s8 }
  0x16   : > { %p2462_p11 = por %p214_p8, %p54_p4  ;;  %p39_p12 = scmp.eq.s32.totalorder %s38_s13, 0 }
  0x17   : > { %s2811_s12 = scalar_select %p2456_p10, 1, 0 }
  0x18   : > { %s2812_s14 = scalar_select %p2462_p11, 1, 0 }
  0x19   : > { %p2141_p13 = scmp.lt.s32.totalorder %s2345_s28, 8  ;;  %s234_s15 = sand.u32 1, %s2325_s23  }
  0x1a   : > { %s2469_s16 = scalar_select %p39_p12, %s2325_s23, %s41_s9  }
  0x1b   : > { %s2126_s17 = smul.u32 80, %s234_s15  ;;  %p2474_p0 = pnand %p2141_p13, %p2444_p3 }
  0x1c   : > { %2813 = sst [smem:[#allocation14_spill]] %s2469_s16  ;;  %s2127_s18 = smul.u32 1280, %s2341_s27 }
  0x1d   : > { %s2815_s0 = sld [smem:[#allocation15_spill]]  ;;  %s238_s9 = scalar_lea.vmem [#allocation2], %s2126_s17 }
  0x1e   : > { %s245_s13 = sshll.u32 %s238_s9, 4  ;;  %s2486_s10 = scalar_lea.sflag [#allocation3], %s234_s15  ;;  %s2483_s13 = int_to_ptr.vmem [resolvable:$true] %s245_s13 }
  0x1f   : > { %p2219_p3 = pneg %p2474_p0 }
  0x23   : > { %s2481_s30 = scalar_lea.hbm %s2815_s0, %s2127_s18  ;;  %s2222_s29 = scalar_lea.hbm %s2815_s0, 2560 }
  0x24   : > { %s2217_s8 = scalar_lea.hbm %s2481_s30, 1280  ;;  %p2223_p6 = scmp.lt.u32.totalorder %s2481_s30, %s2815_s0 }
  0x25   : > { %p2218_p2 = scmp.ne.s32.totalorder %s2481_s30, %s2217_s8  ;;  %p2224_p7 = scmp.lt.u32.totalorder %s2222_s29, %s2217_s8 }
  0x26   : > { %p2226_p12 = scmp.lt.u32.totalorder %s2217_s8, %s2481_s30 }
  0x27   : > { %p2220_p4 = pnand %p2219_p3, %p2218_p2  ;;  %p2225_p8 = por %p2224_p7, %p2223_p6 }
  0x29   : > { %p2221_p5 = pneg %p2220_p4  ;;  %p2227_p13 = por %p2226_p12, %p2225_p8 }
  0x2b   : > { %p2228_p1 = pnand %p2227_p13, %p2221_p5 }
  0x2d   : > { %2231 = shalt.err (!%p2228_p1)
}
  0x2e   : > { %s2232_s15 = scalar_lea.vmem %s2483_s13, 1280  ;;  %s2347_s9 = smov [#allocation2]  }
  0x2f   : > { %p2233_p2 = scmp.ne.s32.totalorder %s2483_s13, %s2232_s15  ;;  %s2237_s18 = sshll.u32 %s2347_s9, 4  ;;  %s2238_s18 = int_to_ptr.vmem [resolvable:$false] %s2237_s18 }
  0x30   : > { %s2239_s7 = scalar_lea.vmem %s2238_s18, 2560  ;;  %p2240_p10 = scmp.lt.s32.totalorder %s2483_s13, %s2238_s18 }
  0x31   : > { %p2235_p4 = pnand %p2233_p2, %p2219_p3  ;;  %p2241_p6 = scmp.lt.s32.totalorder %s2239_s7, %s2232_s15 }
  0x33   : > { %p2236_p11 = pneg %p2235_p4  ;;  %p2242_p7 = por %p2241_p6, %p2240_p10 }
  0x35   : > { %p2243_p8 = pnand %p2242_p7, %p2236_p11 }
  0x37   : > { %2246 = shalt.err (!%p2243_p8)
}
  0x38   : > { %s2348_s8 = smov 128   ;;  %s2349_s20 = smov 8  }
  0x39   : > { %2136 = dma.hbm_to_vmem [thread:$0]  (!%p2474_p0), %s2481_s30, 1280, %s2483_s13, %s2486_s10, %s2348_s8, %s2348_s8, %s2349_s20  }
  0x3a   : > { %p290_p1 = scmp.lt.s32.totalorder %s2345_s28, 9  ;;  %p2816_p3 = scmp.ge.s32.totalorder %s2345_s28, 1 }
  0x3c   : > { %p291_p5 = pnand %p2816_p3, %p290_p1 }
  0x3d   : > { %s2518_s29 = sand.u32 (!%p291_p5), 1, %s2321_s22  }
  0x3e   : > { %294 = sbr.rel (%p291_p5) target bundleno = 1290 (0x50a), region = 44  ;;  %s297_s15 = scalar_lea.sflag (!%p291_p5), [#allocation3], %s2518_s29 }
  0x3f   : > { %s2128_s17 = smul.u32 (!%p291_p5), 80, %s2518_s29 }
  0x41   : > { %s300_s9 = scalar_lea.vmem (!%p291_p5), [#allocation2], %s2128_s17 }
  0x45   : > { %2308 = dma.done.wait (%p2452_p9), %s297_s15, 1280  }
  0x46   : > { %2310 = vsyncadd (%p2452_p9), %s297_s15, 4294966016  ;;  %s1901_s19 = sshll.u32 %s2518_s29, 6  ;;  %p351_p10 = scmp.lt.s32.totalorder %s2329_s24, 3  ;;  %v374_v0 = vld [vmem:[%s300_s9] sm:$0xff]  ;;  %v375_v1 = vld [vmem:[%s300_s9 + $0x8] sm:$0xff] }
  0x47   : > { %v376_v2 = vld [vmem:[%s300_s9 + $0x10] sm:$0xff]  ;;  %v377_v3 = vld [vmem:[%s300_s9 + $0x18] sm:$0xff]  ;;  %v378_v4 = vld [vmem:[%s300_s9 + $0x20] sm:$0xff]  ;;  %s2554_s26 = scalar_lea.vmem [#allocation5], %s1901_s19  ;;  %p1909_p9 = scmp.ne.s32.totalorder %s2329_s24, 0 }
  0x48   : > { %s352_s30 = scalar_select %p351_p10, %s2329_s24, 3  ;;  %v379_v5 = vld [vmem:[%s300_s9 + $0x28] sm:$0xff]  ;;  %v380_v6 = vld [vmem:[%s300_s9 + $0x30] sm:$0xff]  ;;  %v381_v7 = vld [vmem:[%s300_s9 + $0x38] sm:$0xff] }
  0x49   : > { %v382_v8 = vld [vmem:[%s300_s9 + $0x40] sm:$0xff]  ;;  %v383_v9 = vld [vmem:[%s300_s9 + $0x48] sm:$0xff]  ;;  %387 = sbr.rel (%p1909_p9) target bundleno = 80 (0x50), region = 52  ;;  %v388_v10 = vmul.f32 (!%p1909_p9), 0.5, %v374_v0  ;;  %vm396_vm0 = vcmask (!%p1909_p9), 130048   ;;  %v389_v11 = vmul.f32 (!%p1909_p9), 0.5, %v375_v1 }
  0x4a   : > { %s1902_s13 = sshll.u32 %s352_s30, 1  ;;  %s1947_s10 = sshll.u32 %s352_s30, 3  ;;  %v390_v12 = vmul.f32 (!%p1909_p9), 0.5, %v376_v2  ;;  %v391_v13 = vmul.f32 (!%p1909_p9), 0.5, %v377_v3  ;;  %v392_v14 = vmul.f32 (!%p1909_p9), 0.5, %v378_v4  ;;  %v393_v15 = vmul.f32 (!%p1909_p9), 0.5, %v379_v5 }
  0x4b   : > { %s2532_s8 = scalar_lea.vmem %s2790_s1, %s1902_s13  ;;  %s2537_s0 = scalar_lea.vmem %s2791_s2, %s1947_s10  ;;  %v394_v16 = vmul.f32 (!%p1909_p9), 0.5, %v380_v6  ;;  %397 = vst.msk [vmem:[%s2554_s26] sm:$0xff] (!%p1909_p9), %vm396_vm0, %v388_v10  ;;  %398 = vst.msk [vmem:[%s2554_s26 + $0x8] sm:$0xff] (!%p1909_p9), %vm396_vm0, %v389_v11  ;;  %v395_v17 = vmul.f32 (!%p1909_p9), 0.5, %v381_v7 }
  0x4c   : > { %s1905_s11 = sshll.u32 %s352_s30, 2  ;;  %s1948_s15 = sshll.u32 %s352_s30, 4  ;;  %399 = vst.msk [vmem:[%s2554_s26 + $0x10] sm:$0xff] (!%p1909_p9), %vm396_vm0, %v390_v12  ;;  %400 = vst.msk [vmem:[%s2554_s26 + $0x18] sm:$0xff] (!%p1909_p9), %vm396_vm0, %v391_v13 }
  0x4d   : > { %s2542_s16 = scalar_lea.vmem %s2792_s3, %s1905_s11  ;;  %s2547_s13 = scalar_lea.vmem %s2793_s4, %s1905_s11  ;;  %401 = vst.msk [vmem:[%s2554_s26 + $0x20] sm:$0xff] (!%p1909_p9), %vm396_vm0, %v392_v14  ;;  %402 = vst.msk [vmem:[%s2554_s26 + $0x28] sm:$0xff] (!%p1909_p9), %vm396_vm0, %v393_v15 }
  0x4e   : > { %s2552_s30 = scalar_lea.vmem %s2794_s5, %s1948_s15  ;;  %403 = vst.msk [vmem:[%s2554_s26 + $0x30] sm:$0xff] (!%p1909_p9), %vm396_vm0, %v394_v16  ;;  %404 = vst.msk [vmem:[%s2554_s26 + $0x38] sm:$0xff] (!%p1909_p9), %vm396_vm0, %v395_v17 }
  0x50 PF: > { %v2216_v18 = vld [vmem:[%s2537_s0] sm:$0xff]   ;;  %v2350_v19 = vmov 0.0   ;;  %v405_v20 = vpack.c.bf16 %v375_v1, %v374_v0  ;;  %vm2351_vm1 = vmmov 0   ;;  %vm418_vm2 = vcmask 130048   ;;  %p1941_p11 = scmp.ne.s32.totalorder %s2329_s24, 3 }
  0x51   : > { %1999 = vmatprep.subr.bf16.mxu0 %v2350_v19  ;;  %2021 = vmatprep.subr.bf16.mxu1 %v2350_v19  ;;  %v406_v21 = vpack.c.bf16 %v377_v3, %v376_v2  ;;  %v407_v22 = vpack.c.bf16 %v379_v5, %v378_v4  ;;  %v408_v23 = vpack.c.bf16 %v381_v7, %v380_v6  ;;  %v512_v30 = vld [vmem:[%s2542_s16] sm:$0xf]  ;;  %v2352_v59 = vmov 1983009808  }
  0x52   : > { %2000 = vmatpush3.bf16.msra.mxu0 %v2216_v18  ;;  %2001 = vmatprep.mubr.msk.bf16.mxu0 %vm2351_vm1, %v2350_v19  ;;  %v409_v24 = vpack.c.bf16 %v383_v9, %v382_v8  ;;  %v719_v60 = vunpack.c.l.s4 %v2352_v59  ;;  %v721_v61 = vlaneseq  ;;  %v2353_v6 = vmov 1934713408  }
  0x53   : > { %2023 = vmatprep.mubr.msk.bf16.mxu1 %vm2351_vm1, %v2350_v19  ;;  %2051 = vmatprep.subr.bf16.mxu0 %v2350_v19  ;;  %v766_v7 = vunpack.c.l.s4 %v2353_v6  ;;  %vm846_vm3 = vcmask 1041408   ;;  %vm847_vm4 = vcmask 1042432   ;;  %vm842_vm5 = vcmask 39936  }
  0x54   : > { %v720_v3 = vunpack.c.0.s8 %v719_v60  ;;  %v722_v4 = vshrl.u32 %v721_v61, 7  ;;  %v841_v60 = vld [vmem:[%s2532_s8] sm:$0x3]  ;;  %vm1308_vm6 = vcmask 1043456   ;;  %vm1301_vm15 = vcmask 64512  }
  0x55   : > { %2002 = vmatmul.mubr.msk.bf16.vlgmr.msra.gmra.mrb[0].mxu0 %vm418_vm2, %v405_v20  ;;  %v767_v13 = vunpack.c.0.s8 %v766_v7  ;;  %v1290_v7 = vld [vmem:[%s2547_s13] sm:$0xf] }
  0x56   : > { %2005 = vmatprep.mubr.msk.bf16.mxu0 %vm2351_vm1, %v2350_v19  ;;  %v2609_v8 = vsub.s32 %v720_v3, %v722_v4 }
  0x5d   : > { %2006 = vmatmul.mubr.msk.bf16.gmra.mrb[4].mxu0 %vm418_vm2, %v406_v21 }
  0x5e   : > { %2009 = vmatprep.mubr.msk.bf16.mxu0 %vm2351_vm1, %v2350_v19 }
  0x65   : > { %2010 = vmatmul.mubr.msk.bf16.gmra.mrb[8].mxu0 %vm418_vm2, %v407_v22 }
  0x66   : > { %2013 = vmatprep.mubr.msk.bf16.mxu0 %vm2351_vm1, %v2350_v19 }
  0x6d   : > { %2014 = vmatmul.mubr.msk.bf16.gmra.mrb[12].mxu0 %vm418_vm2, %v408_v23 }
  0x6e   : > { %2017 = vmatprep.mubr.msk.bf16.mxu0 %vm2351_vm1, %v2350_v19 }
  0x75   : > { %2018 = vmatmul.mubr.msk.bf16.gmra.mrb[16].mxu0 %vm418_vm2, %v409_v24 }
  0x76   : > { %2053 = vmatprep.mubr.msk.bf16.mxu0 %vm2351_vm1, %v2350_v19 }
 0x128   : > { %v468_v25 = vpop.f32.mrb[0].mxu0 }
 0x129   : > { %v2003_v26 = vpop.f32.mrb[1].mxu0 }
 0x12a   : > { %v471_v27 = vpop.f32.mrb[2].mxu0 }
 0x12b   : > { %v507_v28 = vpack.c.bf16 %v471_v27, %v468_v25  ;;  %v2004_v29 = vpop.f32.mrb[3].mxu0  ;;  %v2615_v25 = vsub.s32 %v767_v13, %v722_v4 }
 0x12d   : > { %2022 = vmatpush3.bf16.msra.mxu1 %v507_v28 }
 0x12e   : > { %2027 = vmatprep.subr.bf16.mxu1 %v2350_v19 }
 0x130   : > { %v476_v31 = vpop.f32.mrb[4].mxu0  ;;  %2024 = vmatmul.mubr.msk.bf16.vlgmr.msra.gmra.mrb[0].mxu1 %vm418_vm2, %v512_v30 }
 0x131   : > { %v2007_v32 = vpop.f32.mrb[5].mxu0  ;;  %2029 = vmatprep.mubr.msk.bf16.mxu1 %vm2351_vm1, %v2350_v19 }
 0x132   : > { %v479_v33 = vpop.f32.mrb[6].mxu0 }
 0x133   : > { %v508_v34 = vpack.c.bf16 %v479_v33, %v476_v31  ;;  %v2008_v35 = vpop.f32.mrb[7].mxu0  ;;  %v2354_v31 = vmov 65535  }
 0x134   : > { %v848_v32 = vsel %vm846_vm3, 4294967295, %v2354_v31 }
 0x135   : > { %2028 = vmatpush3.bf16.msra.mxu1 %v508_v34 }
 0x136   : > { %2033 = vmatprep.subr.bf16.mxu1 %v2350_v19 }
 0x138   : > { %v484_v36 = vpop.f32.mrb[8].mxu0  ;;  %2030 = vmatmul.mubr.msk.bf16.vlgmr.msra.gmra.mrb[4].mxu1 %vm418_vm2, %v512_v30 }
 0x139   : > { %v2011_v37 = vpop.f32.mrb[9].mxu0  ;;  %2035 = vmatprep.mubr.msk.bf16.mxu1 %vm2351_vm1, %v2350_v19 }
 0x13a   : > { %v487_v38 = vpop.f32.mrb[10].mxu0 }
 0x13b   : > { %v509_v39 = vpack.c.bf16 %v487_v38, %v484_v36  ;;  %v2012_v40 = vpop.f32.mrb[11].mxu0 }
 0x13d   : > { %2034 = vmatpush3.bf16.msra.mxu1 %v509_v39 }
 0x13e   : > { %2039 = vmatprep.subr.bf16.mxu1 %v2350_v19 }
 0x140   : > { %v492_v41 = vpop.f32.mrb[12].mxu0  ;;  %2036 = vmatmul.mubr.msk.bf16.vlgmr.msra.gmra.mrb[8].mxu1 %vm418_vm2, %v512_v30 }
 0x141   : > { %v2015_v42 = vpop.f32.mrb[13].mxu0  ;;  %2041 = vmatprep.mubr.msk.bf16.mxu1 %vm2351_vm1, %v2350_v19 }
 0x142   : > { %v495_v43 = vpop.f32.mrb[14].mxu0 }
 0x143   : > { %v510_v44 = vpack.c.bf16 %v495_v43, %v492_v41  ;;  %v2016_v45 = vpop.f32.mrb[15].mxu0 }
 0x145   : > { %2040 = vmatpush3.bf16.msra.mxu1 %v510_v44 }
 0x146   : > { %2045 = vmatprep.subr.bf16.mxu1 %v2350_v19 }
 0x148   : > { %v500_v46 = vpop.f32.mrb[16].mxu0  ;;  %2042 = vmatmul.mubr.msk.bf16.vlgmr.msra.gmra.mrb[12].mxu1 %vm418_vm2, %v512_v30 }
 0x149   : > { %v2019_v47 = vpop.f32.mrb[17].mxu0  ;;  %2047 = vmatprep.mubr.msk.bf16.mxu1 %vm2351_vm1, %v2350_v19 }
 0x14a   : > { %v503_v48 = vpop.f32.mrb[18].mxu0 }
 0x14b   : > { %v511_v49 = vpack.c.bf16 %v503_v48, %v500_v46  ;;  %v2020_v50 = vpop.f32.mrb[19].mxu0  ;;  %v849_v46 = vsel %vm847_vm4, %v848_v32, 0 }
 0x14d   : > { %2046 = vmatpush3.bf16.msra.mxu1 %v511_v49 }
 0x14e   : > { %2057 = vmatprep.subr.bf16.mxu1 %v2350_v19 }
 0x150   : > { %2048 = vmatmul.mubr.msk.bf16.vlgmr.msra.gmra.mrb[16].mxu1 %vm418_vm2, %v512_v30 }
 0x151   : > { %2059 = vmatprep.mubr.msk.bf16.mxu1 %vm2351_vm1, %v2350_v19 }
 0x203   : > { %v550_v51 = vpop.f32.mrb[0].mxu1 }
 0x204   : > { %v2025_v52 = vpop.f32.mrb[1].mxu1 }
 0x205   : > { %v553_v53 = vpop.f32.mrb[2].mxu1 }
 0x206   : > { %v2026_v54 = vpop.f32.mrb[3].mxu1 }
 0x20b   : > { %v590_v55 = vpop.f32.mrb[4].mxu1 }
 0x20c   : > { %v2031_v56 = vpop.f32.mrb[5].mxu1 }
 0x20d   : > { %v593_v57 = vpop.f32.mrb[6].mxu1 }
 0x20e   : > { %v2032_v58 = vpop.f32.mrb[7].mxu1 }
 0x213   : > { %v630_v62 = vpop.f32.mrb[8].mxu1 }
 0x214   : > { %v716_v63 = vcombine.low %v550_v51, %v630_v62  ;;  %v717_v0 = vcombine.high %v550_v51, %v630_v62  ;;  %v2037_v1 = vpop.f32.mrb[9].mxu1 }
 0x215   : > { %v633_v2 = vpop.f32.mrb[10].mxu1 }
 0x216   : > { %v2038_v5 = vpop.f32.mrb[11].mxu1  ;;  %v724_v15 = vrot.slane %v716_v63, %v2609_v8  ;;  %v731_v16 = vrot.slane %v717_v0, %v2609_v8 }
 0x21b   : > { %v670_v9 = vpop.f32.mrb[12].mxu1 }
 0x21c   : > { %v732_v10 = vcombine.low %v590_v55, %v670_v9  ;;  %v733_v11 = vcombine.high %v590_v55, %v670_v9  ;;  %v2043_v12 = vpop.f32.mrb[13].mxu1  ;;  %v1310_v9 = vsel %vm1308_vm6, %v1290_v7, 0 }
 0x21d   : > { %v673_v14 = vpop.f32.mrb[14].mxu1 }
 0x21e   : > { %v740_v17 = vrot.slane %v732_v10, %v2609_v8  ;;  %v747_v18 = vrot.slane %v733_v11, %v2609_v8  ;;  %v2044_v20 = vpop.f32.mrb[15].mxu1 }
 0x220   : > { %v763_v21 = vcombine.low %v724_v15, %v740_v17  ;;  %v764_v22 = vcombine.high %v724_v15, %v740_v17  ;;  %v779_v23 = vcombine.low %v731_v16, %v747_v18  ;;  %v780_v24 = vcombine.high %v731_v16, %v747_v18 }
 0x222   : > { %v771_v34 = vrot.slane %v763_v21, %v2615_v25  ;;  %v778_v38 = vrot.slane %v764_v22, %v2615_v25  ;;  %v787_v39 = vrot.slane %v779_v23, %v2615_v25  ;;  %v794_v44 = vrot.slane %v780_v24, %v2615_v25 }
 0x223   : > { %v710_v26 = vpop.f32.mrb[16].mxu1 }
 0x224   : > { %v748_v27 = vcombine.high %v710_v26, %v2350_v19  ;;  %v755_v28 = vrot.slane %v710_v26, %v2609_v8  ;;  %v2049_v29 = vpop.f32.mrb[17].mxu1 }
 0x225   : > { %v713_v30 = vpop.f32.mrb[18].mxu1 }
 0x226   : > { %v762_v33 = vrot.slane %v748_v27, %v2609_v8  ;;  %v795_v35 = vcombine.high %v755_v28, %v2350_v19  ;;  %v802_v36 = vrot.slane %v755_v28, %v2615_v25  ;;  %v2050_v37 = vpop.f32.mrb[19].mxu1 }
 0x228   : > { %v809_v40 = vrot.slane %v795_v35, %v2615_v25  ;;  %v810_v41 = vcombine.high %v762_v33, %v2350_v19  ;;  %v817_v42 = vrot.slane %v762_v33, %v2615_v25  ;;  %v825_v43 = vcombine.low %v771_v34, %v802_v36 }
 0x229   : > { %v826_v45 = vcombine.high %v771_v34, %v802_v36 }
 0x22a   : > { %v824_v47 = vrot.slane %v810_v41, %v2615_v25  ;;  %v827_v48 = vcombine.low %v778_v38, %v809_v40  ;;  %v828_v49 = vcombine.high %v778_v38, %v809_v40  ;;  %v829_v50 = vcombine.low %v787_v39, %v817_v42 }
 0x22b   : > { %v830_v51 = vcombine.high %v787_v39, %v817_v42  ;;  %v833_v52 = vpack.c.bf16 %v825_v43, %v825_v43  ;;  %v834_v53 = vpack.c.bf16 %v826_v45, %v826_v45 }
 0x22c   : > { %v831_v54 = vcombine.low %v794_v44, %v824_v47  ;;  %v832_v55 = vcombine.high %v794_v44, %v824_v47  ;;  %v835_v56 = vpack.c.bf16 %v827_v48, %v827_v48  ;;  %v836_v57 = vpack.c.bf16 %v828_v49, %v828_v49 }
 0x22d   : > { %v851_v58 = vand.u32 %v849_v46, %v833_v52  ;;  %v894_v59 = vand.u32 %v849_v46, %v834_v53  ;;  %v837_v63 = vpack.c.bf16 %v829_v50, %v829_v50  ;;  %v838_v0 = vpack.c.bf16 %v830_v51, %v830_v51 }
 0x22e   : > { %v937_v61 = vand.u32 %v849_v46, %v835_v56  ;;  %v980_v62 = vand.u32 %v849_v46, %v836_v57  ;;  %v839_v3 = vpack.c.bf16 %v831_v54, %v831_v54  ;;  %v840_v4 = vpack.c.bf16 %v832_v55, %v832_v55 }
 0x22f   : > { %2052 = vmatpush3.bf16.msra.mxu0 %v851_v58  ;;  %2058 = vmatpush3.bf16.msra.mxu1 %v894_v59  ;;  %v1023_v1 = vand.u32 %v849_v46, %v837_v63  ;;  %v1066_v2 = vand.u32 %v849_v46, %v838_v0 }
 0x230   : > { %2063 = vmatprep.subr.bf16.mxu0 %v2350_v19  ;;  %2069 = vmatprep.subr.bf16.mxu1 %v2350_v19  ;;  %v1109_v5 = vand.u32 %v849_v46, %v839_v3  ;;  %v1152_v6 = vand.u32 %v849_v46, %v840_v4 }
 0x232   : > { %2054 = vmatmul.mubr.msk.bf16.vlgmr.msra.gmra.mrb[20].mxu0 %vm842_vm5, %v841_v60  ;;  %2060 = vmatmul.mubr.msk.bf16.vlgmr.msra.gmra.mrb[20].mxu1 %vm842_vm5, %v841_v60 }
 0x233   : > { %2064 = vmatpush3.bf16.msra.mxu0 %v937_v61  ;;  %2070 = vmatpush3.bf16.msra.mxu1 %v980_v62 }
 0x234   : > { %2065 = vmatprep.mubr.msk.bf16.mxu0 %vm2351_vm1, %v2350_v19  ;;  %2071 = vmatprep.mubr.msk.bf16.mxu1 %vm2351_vm1, %v2350_v19 }
 0x235   : > { %2075 = vmatprep.subr.bf16.mxu0 %v2350_v19  ;;  %2081 = vmatprep.subr.bf16.mxu1 %v2350_v19 }
 0x23a   : > { %2066 = vmatmul.mubr.msk.bf16.vlgmr.msra.gmra.mrb[24].mxu0 %vm842_vm5, %v841_v60  ;;  %2072 = vmatmul.mubr.msk.bf16.vlgmr.msra.gmra.mrb[24].mxu1 %vm842_vm5, %v841_v60 }
 0x23b   : > { %2076 = vmatpush3.bf16.msra.mxu0 %v1023_v1  ;;  %2082 = vmatpush3.bf16.msra.mxu1 %v1066_v2 }
 0x23c   : > { %2077 = vmatprep.mubr.msk.bf16.mxu0 %vm2351_vm1, %v2350_v19  ;;  %2083 = vmatprep.mubr.msk.bf16.mxu1 %vm2351_vm1, %v2350_v19 }
 0x23d   : > { %2087 = vmatprep.subr.bf16.mxu0 %v2350_v19  ;;  %2093 = vmatprep.subr.bf16.mxu1 %v2350_v19 }
 0x242   : > { %2078 = vmatmul.mubr.msk.bf16.vlgmr.msra.gmra.mrb[28].mxu0 %vm842_vm5, %v841_v60  ;;  %2084 = vmatmul.mubr.msk.bf16.vlgmr.msra.gmra.mrb[28].mxu1 %vm842_vm5, %v841_v60 }
 0x243   : > { %2088 = vmatpush3.bf16.msra.mxu0 %v1109_v5  ;;  %2094 = vmatpush3.bf16.msra.mxu1 %v1152_v6 }
 0x244   : > { %2089 = vmatprep.mubr.msk.bf16.mxu0 %vm2351_vm1, %v2350_v19  ;;  %2095 = vmatprep.mubr.msk.bf16.mxu1 %vm2351_vm1, %v2350_v19 }
 0x245   : > { %2125 = vmatprep.subr.msk.bf16.mxu0 %vm1308_vm6, %v1290_v7 }
 0x24a   : > { %2090 = vmatmul.mubr.msk.bf16.vlgmr.msra.gmra.mrb[32].mxu0 %vm842_vm5, %v841_v60  ;;  %2096 = vmatmul.mubr.msk.bf16.vlgmr.msra.gmra.mrb[32].mxu1 %vm842_vm5, %v841_v60 }
 0x24b   : > { %2100 = vmatpush3.bf16.msra.mxu0 %v1310_v9 }
 0x305   : > { %v887_v10 = vpop.f32.mrb[20].mxu0  ;;  %v930_v11 = vpop.f32.mrb[20].mxu1 }
 0x306   : > { %v2055_v12 = vpop.f32.mrb[21].mxu0  ;;  %v2061_v13 = vpop.f32.mrb[21].mxu1  ;;  %v1202_v18 = vmul.f32 0.1, %v887_v10  ;;  %v1203_v20 = vmul.f32 0.1, %v930_v11 }
 0x307   : > { %v890_v14 = vpop.f32.mrb[22].mxu0  ;;  %v933_v15 = vpop.f32.mrb[22].mxu1  ;;  %vm1194_vm7 = vcmp.gt.f32.partialorder %v887_v10, 0.0  ;;  %vm1195_vm8 = vcmp.gt.f32.partialorder %v930_v11, 0.0 }
 0x308   : > { %v2056_v16 = vpop.f32.mrb[23].mxu0  ;;  %v2062_v17 = vpop.f32.mrb[23].mxu1  ;;  %v1210_v27 = vsel %vm1194_vm7, %v887_v10, %v1202_v18  ;;  %v1211_v28 = vsel %vm1195_vm8, %v930_v11, %v1203_v20 }
 0x30d   : > { %v973_v19 = vpop.f32.mrb[24].mxu0  ;;  %v1016_v21 = vpop.f32.mrb[24].mxu1 }
 0x30e   : > { %vm1196_vm9 = vcmp.gt.f32.partialorder %v973_v19, 0.0  ;;  %v1204_v22 = vmul.f32 0.1, %v973_v19  ;;  %vm1197_vm10 = vcmp.gt.f32.partialorder %v1016_v21, 0.0  ;;  %v1205_v23 = vmul.f32 0.1, %v1016_v21 }
 0x30f   : > { %v2067_v24 = vpop.f32.mrb[25].mxu0  ;;  %v2073_v26 = vpop.f32.mrb[25].mxu1 }
 0x310   : > { %v1212_v29 = vsel %vm1196_vm9, %v973_v19, %v1204_v22  ;;  %v1213_v30 = vsel %vm1197_vm10, %v1016_v21, %v1205_v23  ;;  %v976_v31 = vpop.f32.mrb[26].mxu0  ;;  %v1019_v32 = vpop.f32.mrb[26].mxu1  ;;  %v1674_v22 = vld [vmem:[%s2554_s26 + $0x28] sm:$0xff]  ;;  %v1673_v24 = vld [vmem:[%s2554_s26 + $0x20] sm:$0xff] }
 0x311   : > { %v1218_v33 = vcombine.low %v1210_v27, %v1212_v29  ;;  %v1226_v34 = vcombine.low %v1211_v28, %v1213_v30  ;;  %v2068_v35 = vpop.f32.mrb[27].mxu0  ;;  %v2074_v36 = vpop.f32.mrb[27].mxu1  ;;  %v1670_v23 = vld [vmem:[%s2554_s26 + $0x8] sm:$0xff]  ;;  %v1669_v26 = vld [vmem:[%s2554_s26] sm:$0xff] }
 0x312   : > { %v1672_v35 = vld [vmem:[%s2554_s26 + $0x18] sm:$0xff]  ;;  %v1671_v36 = vld [vmem:[%s2554_s26 + $0x10] sm:$0xff] }
 0x313   : > { %v1225_v37 = vrot.slane %v1218_v33, %v2609_v8  ;;  %v1233_v38 = vrot.slane %v1226_v34, %v2609_v8 }
 0x315   : > { %v1250_v39 = vcombine.low %v1225_v37, %v1233_v38  ;;  %v1251_v40 = vcombine.high %v1225_v37, %v1233_v38  ;;  %v1059_v41 = vpop.f32.mrb[28].mxu0  ;;  %v1102_v42 = vpop.f32.mrb[28].mxu1 }
 0x316   : > { %v2079_v43 = vpop.f32.mrb[29].mxu0  ;;  %v2085_v44 = vpop.f32.mrb[29].mxu1  ;;  %v1206_v49 = vmul.f32 0.1, %v1059_v41  ;;  %v1207_v50 = vmul.f32 0.1, %v1102_v42 }
 0x317   : > { %v1062_v45 = vpop.f32.mrb[30].mxu0  ;;  %v1105_v46 = vpop.f32.mrb[30].mxu1  ;;  %vm1198_vm11 = vcmp.gt.f32.partialorder %v1059_v41, 0.0  ;;  %vm1199_vm12 = vcmp.gt.f32.partialorder %v1102_v42, 0.0  ;;  %v1258_v7 = vrot.slane %v1250_v39, %v2615_v25  ;;  %v1265_v9 = vrot.slane %v1251_v40, %v2615_v25 }
 0x318   : > { %v2080_v47 = vpop.f32.mrb[31].mxu0  ;;  %v2086_v48 = vpop.f32.mrb[31].mxu1  ;;  %v1214_v57 = vsel %vm1198_vm11, %v1059_v41, %v1206_v49  ;;  %v1215_v58 = vsel %vm1199_vm12, %v1102_v42, %v1207_v50  ;;  %v1676_v41 = vld [vmem:[%s2554_s26 + $0x38] sm:$0xff]  ;;  %v1675_v42 = vld [vmem:[%s2554_s26 + $0x30] sm:$0xff] }
 0x31d   : > { %v1145_v51 = vpop.f32.mrb[32].mxu0  ;;  %v1188_v52 = vpop.f32.mrb[32].mxu1 }
 0x31e   : > { %vm1200_vm13 = vcmp.gt.f32.partialorder %v1145_v51, 0.0  ;;  %v1208_v53 = vmul.f32 0.1, %v1145_v51  ;;  %vm1201_vm14 = vcmp.gt.f32.partialorder %v1188_v52, 0.0  ;;  %v1209_v54 = vmul.f32 0.1, %v1188_v52 }
 0x31f   : > { %v2091_v55 = vpop.f32.mrb[33].mxu0  ;;  %v2097_v56 = vpop.f32.mrb[33].mxu1 }
 0x320   : > { %v1216_v59 = vsel %vm1200_vm13, %v1145_v51, %v1208_v53  ;;  %v1217_v60 = vsel %vm1201_vm14, %v1188_v52, %v1209_v54  ;;  %v1148_v61 = vpop.f32.mrb[34].mxu0  ;;  %v1191_v62 = vpop.f32.mrb[34].mxu1 }
 0x321   : > { %v1234_v63 = vcombine.low %v1214_v57, %v1216_v59  ;;  %v1242_v0 = vcombine.low %v1215_v58, %v1217_v60  ;;  %v2092_v1 = vpop.f32.mrb[35].mxu0  ;;  %v2098_v2 = vpop.f32.mrb[35].mxu1 }
 0x323   : > { %v1241_v3 = vrot.slane %v1234_v63, %v2609_v8  ;;  %v1249_v4 = vrot.slane %v1242_v0, %v2609_v8  ;;  %v1361_v8 = vld [vmem:[%s2552_s30] sm:$0xff] }
 0x324   : > { %2107 = vmatprep.mubr.msk.f32.mxu1 %vm1301_vm15, %v1361_v8 }
 0x325   : > { %v1266_v5 = vcombine.low %v1241_v3, %v1249_v4  ;;  %v1267_v6 = vcombine.high %v1241_v3, %v1249_v4 }
 0x327   : > { %v1274_v10 = vrot.slane %v1266_v5, %v2615_v25  ;;  %v1281_v11 = vrot.slane %v1267_v6, %v2615_v25  ;;  %v1362_v25 = vld [vmem:[%s2552_s30 + $0x8] sm:$0xff] }
 0x329   : > { %v1284_v12 = vcombine.low %v1265_v9, %v1281_v11  ;;  %v1285_v13 = vcombine.high %v1265_v9, %v1281_v11  ;;  %v1282_v14 = vcombine.low %v1258_v7, %v1274_v10  ;;  %v1283_v15 = vcombine.high %v1258_v7, %v1274_v10 }
 0x32b   : > { %v1949_v16 = vpack.c.bf16 %v1283_v15, %v1282_v14  ;;  %v1950_v17 = vpack.c.bf16 %v1285_v13, %v1284_v12 }
 0x32d   : > { %2101 = vmatprep.mubr.msk.bf16.mxu0 %vm1301_vm15, %v1949_v16 }
 0x32e   : > { %2102 = vmatmul.mubr.msk.bf16.vlgmr.msra.gmra.mrb[36].mxu0 %vm1301_vm15, %v1950_v17 }
 0x32f   : > { %2117 = vmatprep.mubr.msk.f32.mxu0 %vm1301_vm15, %v1361_v8 }
 0x401   : > { %v2103_v18 = vpop.f32.mrb[36].mxu0 }
 0x402   : > { %v1346_v20 = vpop.f32.mrb[37].mxu0  ;;  %2115 = vmatprep.subr.mxu0 %v2103_v18 }
 0x403   : > { %v2104_v19 = vpop.f32.mrb[38].mxu0  ;;  %2105 = vmatprep.subr.mxu1 %v1346_v20  ;;  %2116 = vmatpush3.msra.mxu0 %v2103_v18 }
 0x404   : > { %v1349_v21 = vpop.f32.mrb[39].mxu0  ;;  %2106 = vmatpush3.msra.mxu1 %v1346_v20  ;;  %2118 = vmatmul.mubr.msk.f32.vlgmr.msra.gmra.mrb[40].mxu0 %vm1301_vm15, %v1362_v25 }
 0x405   : > { %2108 = vmatmul.mubr.msk.f32.vlgmr.msra.gmra.mrb[36].mxu1 %vm1301_vm15, %v1362_v25  ;;  %2110 = vmatprep.subr.mxu1 %v1349_v21 }
 0x406   : > { %2111 = vmatpush3.msra.mxu1 %v1349_v21  ;;  %2112 = vmatprep.mubr.msk.f32.mxu1 %vm1301_vm15, %v1361_v8 }
 0x407   : > { %2120 = vmatprep.subr.mxu1 %v2104_v19 }
 0x409   : > { %2113 = vmatmul.mubr.msk.f32.vlgmr.msra.gmra.mrb[38].mxu1 %vm1301_vm15, %v1362_v25 }
 0x40a   : > { %2121 = vmatpush3.msra.mxu1 %v2104_v19  ;;  %2122 = vmatprep.mubr.msk.f32.mxu1 %vm1301_vm15, %v1361_v8 }
 0x40d   : > { %2123 = vmatmul.mubr.msk.f32.vlgmr.msra.gmra.mrb[40].mxu1 %vm1301_vm15, %v1362_v25 }
 0x4d7   : > { %v2119_v27 = vpop.f32.mrb[40].mxu0 }
 0x4d8   : > { %v2109_v28 = vpop.f32.mrb[36].mxu1  ;;  %v1682_v29 = vadd.f32 %v2119_v27, %v1674_v22  ;;  %v1585_v30 = vpop.f32.mrb[41].mxu0 }
 0x4d9   : > { %v1678_v31 = vadd.f32 %v2109_v28, %v1670_v23  ;;  %v1435_v32 = vpop.f32.mrb[37].mxu1  ;;  %v1681_v33 = vadd.f32 %v1673_v24, %v1585_v30 }
 0x4da   : > { %v1677_v34 = vadd.f32 %v1669_v26, %v1435_v32  ;;  %1690 = vst.msk [vmem:[%s2554_s26 + $0x28] sm:$0xff] %vm418_vm2, %v1682_v29 }
 0x4db   : > { %1686 = vst.msk [vmem:[%s2554_s26 + $0x8] sm:$0xff] %vm418_vm2, %v1678_v31  ;;  %1689 = vst.msk [vmem:[%s2554_s26 + $0x20] sm:$0xff] %vm418_vm2, %v1681_v33 }
 0x4dc   : > { %1685 = vst.msk [vmem:[%s2554_s26] sm:$0xff] %vm418_vm2, %v1677_v34  ;;  %v2114_v37 = vpop.f32.mrb[38].mxu1 }
 0x4dd   : > { %v1680_v38 = vadd.f32 %v2114_v37, %v1672_v35  ;;  %v1510_v39 = vpop.f32.mrb[39].mxu1 }
 0x4de   : > { %v1679_v40 = vadd.f32 %v1671_v36, %v1510_v39  ;;  %1696 = sbr.rel (%p1941_p11) target bundleno = 1264 (0x4f0), region = 56 }
 0x4df   : > { %1688 = vst.msk [vmem:[%s2554_s26 + $0x18] sm:$0xff] %vm418_vm2, %v1680_v38 }
 0x4e0   : > { %1687 = vst.msk [vmem:[%s2554_s26 + $0x10] sm:$0xff] %vm418_vm2, %v1679_v40  ;;  %v2124_v43 = vpop.f32.mrb[40].mxu1 }
 0x4e1   : > { %v1684_v44 = vadd.f32 %v2124_v43, %v1676_v41  ;;  %v1660_v45 = vpop.f32.mrb[41].mxu1  ;;  %v1702_v55 = vld [vmem:[%s2554_s26 + $0x28] sm:$0xff] (!%p1941_p11) }
 0x4e2   : > { %v1683_v46 = vadd.f32 %v1675_v42, %v1660_v45  ;;  %v1698_v48 = vld [vmem:[%s2554_s26 + $0x8] sm:$0xff] (!%p1941_p11)  ;;  %v1701_v54 = vld [vmem:[%s2554_s26 + $0x20] sm:$0xff] (!%p1941_p11)  ;;  %vm1710_vm6 = vcmp.gt.f32.partialorder (!%p1941_p11), %v1702_v55, 0.0  ;;  %v1718_v0 = vmul.f32 (!%p1941_p11), 0.1, %v1702_v55 }
 0x4e3   : > { %1692 = vst.msk [vmem:[%s2554_s26 + $0x38] sm:$0xff] %vm418_vm2, %v1684_v44  ;;  %v1697_v47 = vld [vmem:[%s2554_s26] sm:$0xff] (!%p1941_p11)  ;;  %vm1706_vm1 = vcmp.gt.f32.partialorder (!%p1941_p11), %v1698_v48, 0.0  ;;  %v1714_v51 = vmul.f32 (!%p1941_p11), 0.1, %v1698_v48  ;;  %vm1709_vm5 = vcmp.gt.f32.partialorder (!%p1941_p11), %v1701_v54, 0.0 }
 0x4e4   : > { %1691 = vst.msk [vmem:[%s2554_s26 + $0x30] sm:$0xff] %vm418_vm2, %v1683_v46  ;;  %vm1705_vm0 = vcmp.gt.f32.partialorder (!%p1941_p11), %v1697_v47, 0.0  ;;  %v1713_v50 = vmul.f32 (!%p1941_p11), 0.1, %v1697_v47  ;;  %v1717_v62 = vmul.f32 (!%p1941_p11), 0.1, %v1701_v54  ;;  %v1726_v4 = vsel (!%p1941_p11), %vm1710_vm6, %v1702_v55, %v1718_v0 }
 0x4e5   : > { %v1722_v57 = vsel %vm1706_vm1, %v1698_v48, %v1714_v51  ;;  %1734 = vst.msk [vmem:[%s2554_s26 + $0x28] sm:$0xff] %vm418_vm2, %v1726_v4 }
 0x4e6   : > { %v1700_v53 = vld [vmem:[%s2554_s26 + $0x18] sm:$0xff]  ;;  %v1721_v56 = vsel %vm1705_vm0, %v1697_v47, %v1713_v50  ;;  %1730 = vst.msk [vmem:[%s2554_s26 + $0x8] sm:$0xff] %vm418_vm2, %v1722_v57  ;;  %v1725_v2 = vsel %vm1709_vm5, %v1701_v54, %v1717_v62 }
 0x4e7   : > { %v1699_v49 = vld [vmem:[%s2554_s26 + $0x10] sm:$0xff]  ;;  %vm1708_vm4 = vcmp.gt.f32.partialorder %v1700_v53, 0.0  ;;  %v1716_v58 = vmul.f32 0.1, %v1700_v53  ;;  %1729 = vst.msk [vmem:[%s2554_s26] sm:$0xff] %vm418_vm2, %v1721_v56  ;;  %1733 = vst.msk [vmem:[%s2554_s26 + $0x20] sm:$0xff] %vm418_vm2, %v1725_v2 }
 0x4e8   : > { %vm1707_vm3 = vcmp.gt.f32.partialorder %v1699_v49, 0.0  ;;  %v1715_v52 = vmul.f32 0.1, %v1699_v49 }
 0x4e9   : > { %v1724_v63 = vsel %vm1708_vm4, %v1700_v53, %v1716_v58 }
 0x4ea   : > { %v1704_v60 = vld [vmem:[%s2554_s26 + $0x38] sm:$0xff]  ;;  %v1723_v61 = vsel %vm1707_vm3, %v1699_v49, %v1715_v52  ;;  %1732 = vst.msk [vmem:[%s2554_s26 + $0x18] sm:$0xff] %vm418_vm2, %v1724_v63 }
 0x4eb   : > { %v1703_v59 = vld [vmem:[%s2554_s26 + $0x30] sm:$0xff]  ;;  %1731 = vst.msk [vmem:[%s2554_s26 + $0x10] sm:$0xff] %vm418_vm2, %v1723_v61  ;;  %vm1712_vm8 = vcmp.gt.f32.partialorder %v1704_v60, 0.0  ;;  %v1720_v3 = vmul.f32 0.1, %v1704_v60 }
 0x4ec   : > { %vm1711_vm7 = vcmp.gt.f32.partialorder %v1703_v59, 0.0  ;;  %v1719_v1 = vmul.f32 0.1, %v1703_v59 }
 0x4ed   : > { %v1728_v6 = vsel %vm1712_vm8, %v1704_v60, %v1720_v3 }
 0x4ee   : > { %v1727_v5 = vsel %vm1711_vm7, %v1703_v59, %v1719_v1  ;;  %1736 = vst.msk [vmem:[%s2554_s26 + $0x38] sm:$0xff] %vm418_vm2, %v1728_v6 }
 0x4ef   : > { %1735 = vst.msk [vmem:[%s2554_s26 + $0x30] sm:$0xff] %vm418_vm2, %v1727_v5 }
 0x4f0 PF: > { %s1951_s0 = sshll.u32 %s2333_s25, 10  ;;  %s1751_s27 = sshll.u32 %s2554_s26, 4  ;;  %s2735_s27 = int_to_ptr.vmem [resolvable:$true] %s1751_s27 }
 0x4f1   : > { %s2732_s24 = scalar_lea.hbm %s2795_s6, %s1951_s0  ;;  %s1738_s16 = scalar_lea.sflag [#allocation4], %s2518_s29 }
 0x4f2   : > { %s2247_s9 = scalar_lea.vmem %s2735_s27, 1024  ;;  %p2817_p12 = scmp.ne.s32.totalorder %s2811_s12, 0 }
 0x4f3   : > { %p2248_p0 = scmp.ne.s32.totalorder %s2735_s27, %s2247_s9  ;;  %s2355_s19 = smov [#allocation5]  }
 0x4f4   : > { %s2251_s7 = sshll.u32 %s2355_s19, 4  ;;  %s2252_s7 = int_to_ptr.vmem [resolvable:$false] %s2251_s7 }
 0x4f5   : > { %p2249_p13 = pnand %p2248_p0, %p2817_p12  ;;  %s2253_s25 = scalar_lea.vmem %s2252_s7, 2048 }
 0x4f6   : > { %p2254_p4 = scmp.lt.s32.totalorder %s2735_s27, %s2252_s7  ;;  %p2255_p6 = scmp.lt.s32.totalorder %s2253_s25, %s2247_s9 }
 0x4f7   : > { %p2250_p2 = pneg %p2249_p13 }
 0x4f8   : > { %p2256_p7 = por %p2255_p6, %p2254_p4 }
 0x4fa   : > { %p2257_p8 = pnand %p2256_p7, %p2250_p2 }
 0x4fc   : > { %2260 = shalt.err (!%p2257_p8)
}
 0x4fd   : > { %s2261_s8 = scalar_lea.hbm %s2732_s24, 1024  ;;  %s2265_s11 = scalar_lea.hbm %s2795_s6, 2048 }
 0x4fe   : > { %p2262_p1 = scmp.ne.s32.totalorder %s2732_s24, %s2261_s8  ;;  %p2266_p10 = scmp.lt.u32.totalorder %s2732_s24, %s2795_s6 }
 0x4ff   : > { %p2267_p9 = scmp.lt.u32.totalorder %s2265_s11, %s2261_s8  ;;  %p2269_p0 = scmp.lt.u32.totalorder %s2261_s8, %s2732_s24 }
 0x500   : > { %p2263_p3 = pnand %p2262_p1, %p2817_p12 }
 0x501   : > { %p2268_p11 = por %p2267_p9, %p2266_p10 }
 0x502   : > { %p2264_p5 = pneg %p2263_p3 }
 0x503   : > { %p2270_p13 = por %p2269_p0, %p2268_p11 }
 0x505   : > { %p2271_p2 = pnand %p2270_p13, %p2264_p5 }
 0x507   : > { %2274 = shalt.err (!%p2271_p2)
}
 0x508   : > { %s2356_s10 = smov 128   ;;  %s2357_s18 = smov 8  }
 0x509   : > { %2131 = dma.vmem_to_hbm [thread:$0]  (%p2817_p12), %s2735_s27, 1024, %s2732_s24, %s1738_s16, %s2356_s10, %s2356_s10, %s2357_s18  }
 0x50a PF: > { %p2142_p4 = scmp.ge.s32.totalorder %s2345_s28, 2  ;;  %s1766_s30 = sand.u32 1, %s2317_s21  }
 0x50b   : > { %p2818_p6 = scmp.ne.s32.totalorder %s2812_s14, 0  ;;  %s1767_s26 = scalar_lea.sflag [#allocation4], %s1766_s30 }
 0x50d   : > { %p2138_p7 = pnand %p2142_p4, %p2818_p6 }
 0x50f   : > { %2312 = dma.done.wait (!%p2138_p7), %s1767_s26, 1024  }
 0x510   : > { %2314 = vsyncadd (!%p2138_p7), %s1767_s26, 4294966272  ;;  %s22_s28 = sadd.s32 1, %s2345_s28   ;;  %s2819_s21 = sld [smem:[#allocation8_spill]] }
 0x511   : > { %p19_p8 = scmp.ge.s32.totalorder %s22_s28, 10   ;;  %s2820_s22 = sld [smem:[#allocation9_spill]] }
 0x512   : > { %s2821_s23 = sld [smem:[#allocation14_spill]]  ;;  %s2822_s24 = sld [smem:[#allocation10_spill]] }
 0x513   : > { %s2823_s25 = sld [smem:[#allocation11_spill]]  ;;  %s2824_s26 = sld [smem:[#allocation12_spill]] }
 0x514   : > { %s2825_s27 = sld [smem:[#allocation13_spill]]  ;;  %21 = sbr.rel (!%p19_p8) target bundleno = 9 (0x9), region = 112 }
 0x51b   :  { %1772 = vsyncpa [#allocation3], 1 }
 0x51c   :  { %1774 = vsyncpa [#allocation3 + $0x1], 1 }
 0x51d   :  { %1775 = vsyncpa [#allocation4], 1 }
 0x51e   :  { %1777 = vsyncpa [#allocation4 + $0x1], 1 }

</bundles_post_ra>
